<compile_context>
chip_gen: v6e
topology: v6e:2x2x1
jax: 0.10.0
libtpu: 0.0.40
codegen_flags: <defaults>
</compile_context>

<pallas_src>
import functools
import math

import jax
import jax.numpy as jnp
from jax.experimental import pallas as pl
from jax.experimental.pallas import tpu as pltpu


def _num_pad(source, target):
    idx = math.ceil(source / target)
    return idx, idx * target - source


def _round_up(x, m):
    return ((x + m - 1) // m) * m


def _unfold_nchw(x, k, dilation, padding, stride):
    """F.unfold equivalent: (N, C, H, W) -> (N, C*k*k, L) with PyTorch ordering.

    Square kernel assumed, matching the PyTorch module which passes
    kernel_size=weight_size[3]."""
    N, C, H, W = x.shape
    xp = jnp.pad(x, ((0, 0), (0, 0), (padding, padding), (padding, padding)))
    Hout = (H + 2 * padding - dilation * (k - 1) - 1) // stride + 1
    Wout = (W + 2 * padding - dilation * (k - 1) - 1) // stride + 1
    patches = []
    for i in range(k):
        for j in range(k):
            r0 = i * dilation
            c0 = j * dilation
            patches.append(
                xp[:, :, r0:r0 + stride * Hout:stride, c0:c0 + stride * Wout:stride]
            )
    out = jnp.stack(patches, axis=2)            # (N, C, k*k, Hout, Wout)
    return out.reshape(N, C * k * k, Hout * Wout)


def _prepare_crxb(x, weight, dilation, padding, stride, half_lvl, crxb_size):
    """Glue: unfold input, quantize weight, pad & tile both into crossbars."""
    O, C, KH, KW = weight.shape
    S = crxb_size
    row_len = C * KH * KW
    crxb_row, row_pads = _num_pad(row_len, S)
    crxb_col, col_pads = _num_pad(O, S)

    x_unfold = _unfold_nchw(x, KW, dilation, padding, stride)   # (N, row_len, L)
    N, _, L = x_unfold.shape

    delta_w = jnp.max(jnp.abs(weight)) / half_lvl
    w_quan = jnp.round(weight / delta_w)                        # quantize_weight
    w_flat = w_quan.reshape(O, row_len)
    w_padded = jnp.pad(w_flat, ((0, col_pads), (0, row_pads)))
    w_crxb = w_padded.reshape(crxb_col, S, crxb_row, S).transpose(0, 2, 1, 3)

    x_padded = jnp.pad(x_unfold, ((0, 0), (0, row_pads), (0, 0)))
    x_crxb = x_padded.reshape(N, crxb_row, S, L)

    return w_crxb.astype(jnp.float32), x_crxb.astype(jnp.float32), L


def _crossbar_kernel(w_ref, x_ref, o_ref, *, delta_g):
    # w_ref: (crxb_col, S, S)  quantized weight crossbars (all output-column tiles)
    # x_ref: (S, TL)           unfolded-input slab for (n, r, l)
    # o_ref: (crxb_col, S, TL)
    Cc, S, _ = w_ref.shape
    TL = x_ref.shape[-1]
    # (G_pos - G_neg) @ x == delta_g * (w @ x) exactly: the Gmin offsets and the
    # relu(+w)/relu(-w) split cancel (enable_SAF=False, the module default).
    w = (w_ref[...] * delta_g).reshape(Cc * S, S)
    out = jnp.dot(w, x_ref[...], preferred_element_type=jnp.float32)
    o_ref[...] = out.reshape(Cc, S, TL)


def crossbar_conv2d_forward(x, weight, *, dilation=1, padding=1, stride=1,
                            nbits=7, Gmax=1.0 / 3000.0, Gmin=1.0 / 3000000.0,
                            crxb_size=32):
    # TODO(synk): enable_SAF stuck-at-fault injection is not modeled (module default is False).
    half_lvl = 2 ** nbits - 1
    delta_g = (Gmax - Gmin) / half_lvl
    S = crxb_size

    w_crxb, x_crxb, L = _prepare_crxb(x, weight, dilation, padding, stride,
                                      half_lvl, crxb_size)
    N, crxb_row = x_crxb.shape[0], x_crxb.shape[1]
    crxb_col = w_crxb.shape[0]

    # Tile the unfold axis: as wide as possible (lane-dense stores, amortizes the
    # per-grid-step overhead) while keeping the double-buffered output block
    # (2 * crxb_col * S * TL * 4 B) comfortably inside VMEM on v5e/v6e/v7x.
    L128 = _round_up(L, 128)
    TL = min(L128, 512)
    while TL > 128 and 2 * crxb_col * S * TL * 4 > (8 << 20):
        TL //= 2
    L_pad = _round_up(L, TL)
    if L_pad != L:
        x_crxb = jnp.pad(x_crxb, ((0, 0), (0, 0), (0, 0), (0, L_pad - L)))

    grid = (N, crxb_row, L_pad // TL)   # l innermost: weight tile stays resident
    kernel = functools.partial(_crossbar_kernel, delta_g=delta_g)

    out = pl.pallas_call(
        kernel,
        out_shape=jax.ShapeDtypeStruct((N, crxb_col, crxb_row, S, L_pad),
                                       jnp.float32),
        grid_spec=pltpu.PrefetchScalarGridSpec(
            num_scalar_prefetch=0,
            grid=grid,
            in_specs=[
                # whole crxb_col batched into the weight block; index_map depends
                # only on r, so it is not re-fetched across the L sweep.
                pl.BlockSpec((crxb_col, None, S, S),
                             lambda n, r, l: (0, r, 0, 0)),
                # x tile read exactly once (no c axis in the grid any more).
                pl.BlockSpec((None, None, S, TL),
                             lambda n, r, l: (n, r, 0, l)),
            ],
            out_specs=pl.BlockSpec((None, crxb_col, None, S, TL),
                                   lambda n, r, l: (n, 0, r, 0, l)),
        ),
        compiler_params=pltpu.CompilerParams(
            dimension_semantics=("parallel", "parallel", "arbitrary")),
    )(w_crxb, x_crxb)

    if L_pad != L:
        # Only needed when L is not a multiple of the tile; avoided in the common
        # (and demo) case so no extra full-output HBM copy is paid.
        out = out[..., :L]
    return out


def _reference(x, weight, *, dilation=1, padding=1, stride=1, nbits=7,
               Gmax=1.0 / 3000.0, Gmin=1.0 / 3000000.0, crxb_size=32):
    """Plain-JAX mirror of the PyTorch forward (two conductance paths), for
    verification only."""
    half_lvl = 2 ** nbits - 1
    delta_g = (Gmax - Gmin) / half_lvl
    w_crxb, x_crxb, L = _prepare_crxb(x, weight, dilation, padding, stride,
                                      half_lvl, crxb_size)
    g_pos = Gmin + jnp.maximum(w_crxb, 0.0) * delta_g
    g_neg = Gmin + jnp.maximum(-w_crxb, 0.0) * delta_g
    out = (jnp.einsum('crij,nrjl->ncril', g_pos, x_crxb)
           - jnp.einsum('crij,nrjl->ncril', g_neg, x_crxb))
    return out


if __name__ == "__main__":
    key = jax.random.PRNGKey(0)
    kx, kw = jax.random.split(key)
    # input NCHW, weight OIHW (square 3x3 kernel, as the module assumes)
    x = jax.random.normal(kx, (2, 4, 16, 16), dtype=jnp.float32)
    weight = 0.1 * jax.random.normal(kw, (8, 4, 3, 3), dtype=jnp.float32)

    out = crossbar_conv2d_forward(x, weight, dilation=1, padding=1, stride=1)
    out = jax.block_until_ready(out)

    ref = _reference(x, weight, dilation=1, padding=1, stride=1)
    assert out.shape == ref.shape == (2, 1, 2, 32, 256), out.shape
    assert jnp.allclose(out, ref, rtol=1e-5, atol=1e-6), "mismatch vs reference"

    print("KERNEL_OK")
</pallas_src>

<mosaic_0001>
module attributes {stable_mosaic.version = 11 : i64} {
  func.func @_crossbar_kernel(%arg0: i32, %arg1: i32, %arg2: i32, %arg3: memref<1x1x32x32xf32, #tpu.memory_space<vmem>>, %arg4: memref<1x1x32x256xf32, #tpu.memory_space<vmem>>, %arg5: memref<1x1x1x32x256xf32, #tpu.memory_space<vmem>>) attributes {dimension_semantics = [#tpu.dimension_semantics<parallel>, #tpu.dimension_semantics<parallel>, #tpu.dimension_semantics<arbitrary>], iteration_bounds = array<i64: 2, 2, 1>, scalar_prefetch = 0 : i64, scratch_operands = 0 : i64, tpu.core_type = #tpu.core_type<tc>, window_params = [{transform_indices = @transform_0, window_bounds = array<i64: 1, 1, 32, 32>}, {transform_indices = @transform_1, window_bounds = array<i64: 1, 1, 32, 256>}, {transform_indices = @transform_2, window_bounds = array<i64: 1, 1, 1, 32, 256>}]} {
    %c0 = arith.constant 0 : index
    %c0_0 = arith.constant 0 : index
    %c0_1 = arith.constant 0 : index
    %c0_2 = arith.constant 0 : index
    %0 = vector.load %arg3[%c0, %c0_0, %c0_1, %c0_2] : memref<1x1x32x32xf32, #tpu.memory_space<vmem>>, vector<1x1x32x32xf32>
    %1 = vector.shape_cast %0 : vector<1x1x32x32xf32> to vector<1x32x32xf32>
    %cst = arith.constant 2.6220473E-6 : f32
    %2 = vector.broadcast %cst : f32 to vector<1x32x32xf32>
    %3 = arith.mulf %1, %2 : vector<1x32x32xf32>
    %4 = vector.shape_cast %3 : vector<1x32x32xf32> to vector<32x32xf32>
    %c0_3 = arith.constant 0 : index
    %c0_4 = arith.constant 0 : index
    %c0_5 = arith.constant 0 : index
    %c0_6 = arith.constant 0 : index
    %5 = vector.load %arg4[%c0_3, %c0_4, %c0_5, %c0_6] : memref<1x1x32x256xf32, #tpu.memory_space<vmem>>, vector<1x1x32x256xf32>
    %6 = vector.shape_cast %5 : vector<1x1x32x256xf32> to vector<32x256xf32>
    %cst_7 = arith.constant dense<0.000000e+00> : vector<32x256xf32>
    %7 = tpu.matmul %4, %6, %cst_7 {dimension_numbers = #tpu.dot_dimension_numbers<[1], [0], [0], [1], [0, 0, 1, 1], [], []>} : vector<32x32xf32>, vector<32x256xf32>, vector<32x256xf32> -> vector<32x256xf32>
    %8 = vector.shape_cast %7 : vector<32x256xf32> to vector<1x32x256xf32>
    %c0_8 = arith.constant 0 : index
    %c0_9 = arith.constant 0 : index
    %c0_10 = arith.constant 0 : index
    %c0_11 = arith.constant 0 : index
    %c0_12 = arith.constant 0 : index
    %9 = vector.load %arg5[%c0_8, %c0_9, %c0_10, %c0_11, %c0_12] : memref<1x1x1x32x256xf32, #tpu.memory_space<vmem>>, vector<1x1x1x32x256xf32>
    %10 = vector.shape_cast %9 : vector<1x1x1x32x256xf32> to vector<1x32x256xf32>
    %11 = vector.shape_cast %8 : vector<1x32x256xf32> to vector<1x1x1x32x256xf32>
    tpu.vector_store %arg5[%c0_8, %c0_9, %c0_10, %c0_11, %c0_12], %11 {strides = array<i32>} : memref<1x1x1x32x256xf32, #tpu.memory_space<vmem>>, vector<1x1x1x32x256xf32>,
    return
  }
  func.func @transform_0(%arg0: i32, %arg1: i32, %arg2: i32) -> (i32, i32, i32, i32) {
    %c0_i32 = arith.constant 0 : i32
    %c0_i32_0 = arith.constant 0 : i32
    %c0_i32_1 = arith.constant 0 : i32
    %c0_i32_2 = arith.constant 0 : i32
    return %c0_i32, %arg1, %c0_i32_0, %c0_i32_1 : i32, i32, i32, i32
  }
  func.func @transform_1(%arg0: i32, %arg1: i32, %arg2: i32) -> (i32, i32, i32, i32) {
    %c0_i32 = arith.constant 0 : i32
    %c0_i32_0 = arith.constant 0 : i32
    return %arg0, %arg1, %c0_i32, %arg2 : i32, i32, i32, i32
  }
  func.func @transform_2(%arg0: i32, %arg1: i32, %arg2: i32) -> (i32, i32, i32, i32, i32) {
    %c0_i32 = arith.constant 0 : i32
    %c0_i32_0 = arith.constant 0 : i32
    %c0_i32_1 = arith.constant 0 : i32
    return %arg0, %c0_i32, %arg1, %c0_i32_0, %arg2 : i32, i32, i32, i32, i32
  }
}

</mosaic_0001>

<bundles_post_ra>
// kernel: tpu_custom_call.1
= control target key start
LH: loop header
LB: loop body
LE: loop exit
PB: predicated region body
PF: predicated region fallthrough
CT: control target
= control target key end

     0   :  { %s1125_s0 = inlined_call_operand.hbm [shape: f32[1,2,32,32], index: 0, kind: input, shape index: {}]   ;;  %s1126_s1 = inlined_call_operand.hbm [shape: f32[2,2,32,256], index: 1, kind: input, shape index: {}]   ;;  %s1127_s2 = inlined_call_operand.hbm [shape: f32[2,1,2,32,256], index: 2, kind: output, shape index: {}]  }
   0x1   :  { %1135 = sst [smem:[#allocation16_spill]] %s1125_s0 }
   0x2   :  { %1136 = sst [smem:[#allocation17_spill]] %s1127_s2 }
   0x3   :  { %7 = vsyncpa [#allocation3], 0 }
   0x4   :  { %9 = vsyncpa [#allocation3 + $0x1], 0 }
   0x5   :  { %10 = vsyncpa [#allocation6], 0 }
   0x6   :  { %12 = vsyncpa [#allocation6 + $0x1], 0 }
   0x7   :  { %13 = vsyncpa [#allocation4], 0 }
   0x8   :  { %15 = vsyncpa [#allocation4 + $0x1], 0  ;;  %s854_s9 = smov 0   ;;  %s856_s10 = smov 0  }
   0x9   :  { %s858_s11 = smov 0   ;;  %s860_s12 = smov 0  }
   0xa   :  { %s862_s13 = smov 0   ;;  %s864_s14 = smov 0  }
   0xb   :  { %s866_s15 = smov 0   ;;  %s868_s16 = smov 0  }
   0xc   :  { %s870_s17 = smov 0   ;;  %s872_s18 = smov 0  }
   0xd   :  { %s874_s19 = smov 0  }
   0xe LB: > { %1137 = sst [smem:[#allocation11_spill]] %s787_s9  ;;  %s1128_s20 = sadd.s32 4294967295, %s827_s19   ;;  %s827_s19 = sphi %s874_s19, %s21_s19   ;;  %s823_s18 = sphi %s872_s18, %s1171_s18   ;;  %s819_s17 = sphi %s870_s17, %s1170_s17   ;;  %s815_s16 = sphi %s868_s16, %s1169_s16   ;;  %s811_s15 = sphi %s866_s15, %s1168_s15   ;;  %s807_s14 = sphi %s864_s14, %s1160_s14   ;;  %s803_s13 = sphi %s862_s13, %s1167_s13   ;;  %s799_s12 = sphi %s860_s12, %s1166_s12   ;;  %s795_s11 = sphi %s858_s11, %s1165_s11   ;;  %s791_s10 = sphi %s856_s10, %s1164_s10   ;;  %s787_s9 = sphi %s854_s9, %s1163_s9  }
   0xf   : > { %1138 = sst [smem:[#allocation12_spill]] %s807_s14  ;;  %s36_s21 = sadd.s32 1, %s819_s17 }
  0x10   : > { %p909_p0 = scmp.ge.s32.totalorder %s36_s21, 2  ;;  %s47_s23 = sadd.s32 1, %s807_s14 }
  0x11   : > { %p54_p1 = scmp.ne.s32.totalorder %s807_s14, %s803_s13  ;;  %p55_p2 = scmp.eq.s32.totalorder %s827_s19, 0 }
  0x12   : > { %s1173_s21 = smov (%p909_p0, %s36_s21), 0  ;;  %p60_p4 = scmp.ne.s32.totalorder %s803_s13, %s799_s12 }
  0x13   : > { %1140 = sst [smem:[#allocation13_spill]] %s1173_s21  ;;  %p923_p3 = por %p55_p2, %p54_p1 }
  0x14   : > { %s930_s25 = ssub.s32 %s819_s17, %s1173_s21  ;;  %p934_p5 = scmp.eq.s32.totalorder %s1128_s20, 0 }
  0x15   : > { %p45_p6 = scmp.eq.s32.totalorder %s930_s25, 0  ;;  %p550_p8 = scmp.lt.s32.totalorder %s827_s19, 4 }
  0x16   : > { %p941_p7 = por %p934_p5, %p60_p4  ;;  %s144_s29 = sand.u32 1, %s807_s14  }
  0x17   : > { %s947_s28 = scalar_select %p45_p6, %s807_s14, %s47_s23  }
  0x18   : > { %s524_s30 = sshll.u32 %s819_s17, 9  ;;  %s503_s3 = sshll.u32 %s144_s29, 5 }
  0x19   : > { %1144 = sst [smem:[#allocation14_spill]] %s947_s28  ;;  %s148_s7 = scalar_lea.vmem [#allocation2], %s503_s3 }
  0x1a   : > { %s1145_s0 = sld [smem:[#allocation16_spill]]  ;;  %s155_s8 = sshll.u32 %s148_s7, 4  ;;  %s156_s8 = int_to_ptr.vmem [resolvable:$true] %s155_s8 }
  0x1b   : > { %p958_p9 = pnand %p550_p8, %p923_p3  ;;  %s145_s20 = scalar_lea.sflag [#allocation3], %s144_s29 }
  0x1c   : > { %s660_s23 = scalar_lea.vmem %s156_s8, 512  ;;  %s829_s21 = smov [#allocation2]  }
  0x1d   : > { %p649_p10 = pneg %p958_p9  ;;  %p661_p11 = scmp.ne.s32.totalorder %s156_s8, %s660_s23 }
  0x1e   : > { %s665_s4 = sshll.u32 %s829_s21, 4  ;;  %s666_s4 = int_to_ptr.vmem [resolvable:$false] %s665_s4 }
  0x1f   : > { %p663_p12 = pnand %p661_p11, %p649_p10  ;;  %p668_p1 = scmp.lt.s32.totalorder %s156_s8, %s666_s4 }
  0x20   : > { %s154_s6 = scalar_lea.hbm %s1145_s0, %s524_s30  ;;  %s667_s30 = scalar_lea.vmem %s666_s4, 1024 }
  0x21   : > { %p664_p13 = pneg %p663_p12  ;;  %p669_p4 = scmp.lt.s32.totalorder %s667_s30, %s660_s23 }
  0x23   : > { %p670_p6 = por %p669_p4, %p668_p1 }
  0x25   : > { %p671_p3 = pnand %p670_p6, %p664_p13 }
  0x27   : > { %674 = shalt.err (!%p671_p3)
}
  0x28   : > { %s830_s24 = smov 128   ;;  %s831_s21 = smov 8  }
  0x29   : > { %542 = dma.hbm_to_vmem [thread:$0]  (!%p958_p9), %s154_s6, 512, %s156_s8, %s145_s20, %s830_s24, %s830_s24, %s831_s21  }
  0x2a   : > { %p510_p10 = scmp.ge.s32.totalorder %s827_s19, 1  ;;  %p188_p11 = scmp.lt.s32.totalorder %s827_s19, 5 }
  0x2b   : > { %s500_s3 = sadd.s32 4294967294, %s827_s19   ;;  %s40_s5 = sadd.s32 1, %s823_s18 }
  0x2c   : > { %p968_p12 = pnand %p510_p10, %p188_p11  ;;  %s77_s7 = sadd.s32 1, %s795_s11 }
  0x2d   : > { %s1175_s5 = smov (!%p909_p0, %s40_s5), %s823_s18  ;;  %p84_p13 = scmp.ne.s32.totalorder %s795_s11, %s791_s10 }
  0x2e   : > { %p90_p1 = scmp.ne.s32.totalorder %s791_s10, %s787_s9  ;;  %p42_p9 = scmp.ge.s32.totalorder %s1175_s5, 2 }
  0x2f   : > { %s1148_s20 = sadd.s32 4294967295, %s827_s19   ;;  %p986_p6 = por %p84_p13, %p55_p2 }
  0x30   : > { %p118_p4 = scmp.eq.s32.totalorder %s1148_s20, 3  ;;  %p992_p3 = por %p90_p1, %p934_p5 }
  0x31   : > { %s1177_s5 = smov (%p42_p9, %s1175_s5), 0  ;;  %p124_p10 = scmp.eq.s32.totalorder %s500_s3, 3 }
  0x32   : > { %1151 = sst [smem:[#allocation15_spill]] %s1177_s5  ;;  %p998_p0 = por %p118_p4, %p84_p13 }
  0x33   : > { %s70_s12 = ssub.s32 %s823_s18, %s1177_s5  ;;  %s165_s23 = sand.u32 1, %s795_s11  }
  0x34   : > { %s1152_s22 = scalar_select %p998_p0, 1, 0 }
  0x35   : > { %s72_s4 = sor.u32 %s70_s12, %s930_s25  ;;  %p1006_p2 = por %p124_p10, %p90_p1 }
  0x36   : > { %p75_p5 = scmp.eq.s32.totalorder %s72_s4, 0  ;;  %s506_s26 = sshll.u32 %s165_s23, 6 }
  0x37   : > { %s1153_s30 = scalar_select %p1006_p2, 1, 0 }
  0x38   : > { %s507_s24 = sshll.u32 %s819_s17, 3  ;;  %s508_s20 = sshll.u32 %s823_s18, 4 }
  0x39   : > { %s1012_s21 = scalar_select %p75_p5, %s795_s11, %s77_s7  }
  0x3a   : > { %s177_s0 = sadd.s32 %s508_s20, %s507_s24  ;;  %s169_s28 = scalar_lea.vmem [#allocation5], %s506_s26 }
  0x3b   : > { %s180_s14 = sshll.u32 %s169_s28, 4  ;;  %s509_s9 = sshll.u32 %s177_s0, 7  ;;  %s181_s14 = int_to_ptr.vmem [resolvable:$true] %s180_s14 }
  0x3c   : > { %s179_s5 = scalar_lea.hbm %s1126_s1, %s509_s9  ;;  %p1022_p11 = pnand %p550_p8, %p986_p6 }
  0x3d   : > { %s166_s12 = scalar_lea.sflag [#allocation6], %s165_s23  ;;  %s688_s7 = scalar_lea.vmem %s181_s14, 1024 }
  0x3e   : > { %p677_p13 = pneg %p1022_p11  ;;  %p689_p1 = scmp.ne.s32.totalorder %s181_s14, %s688_s7 }
  0x3f   : > { %s832_s0 = smov [#allocation5]  }
  0x40   : > { %p691_p9 = pnand %p689_p1, %p677_p13  ;;  %s693_s28 = sshll.u32 %s832_s0, 4  ;;  %s694_s28 = int_to_ptr.vmem [resolvable:$false] %s693_s28 }
  0x41   : > { %s695_s4 = scalar_lea.vmem %s694_s28, 2048  ;;  %p696_p10 = scmp.lt.s32.totalorder %s181_s14, %s694_s28 }
  0x42   : > { %p692_p4 = pneg %p691_p9  ;;  %p697_p5 = scmp.lt.s32.totalorder %s695_s4, %s688_s7 }
  0x44   : > { %p698_p2 = por %p697_p5, %p696_p10 }
  0x46   : > { %p699_p0 = pnand %p698_p2, %p692_p4 }
  0x48   : > { %702 = shalt.err (!%p699_p0)
}
  0x49   : > { %s833_s2 = smov 256   ;;  %s834_s9 = smov 16  }
  0x4a   : > { %545 = dma.hbm_to_vmem [thread:$0]  (!%p1022_p11), %s179_s5, 1024, %s181_s14, %s166_s12, %s833_s2, %s833_s2, %s834_s9  }
  0x4b   : > { %192 = sbr.rel (%p968_p12) target bundleno = 308 (0x134), region = 28  ;;  %s194_s6 = sand.u32 (!%p968_p12), 1, %s803_s13  }
  0x4c   : > { %s511_s23 = sshll.u32 (!%p968_p12), %s194_s6, 5  ;;  %s195_s26 = scalar_lea.sflag (!%p968_p12), [#allocation3], %s194_s6 }
  0x4d   : > { %s1033_s24 = scalar_lea.vmem (!%p968_p12), [#allocation2], %s511_s23 }
  0x50   : > { %774 = dma.done.wait (%p941_p7), %s195_s26, 512  }
  0x51   : > { %776 = vsyncadd (%p941_p7), %s195_s26, 4294966784  ;;  %s1040_s20 = sand.u32 1, %s791_s10  }
  0x52   : > { %s512_s14 = sshll.u32 %s1040_s20, 6  ;;  %s204_s29 = scalar_lea.sflag [#allocation6], %s1040_s20 }
  0x53   : > { %s207_s5 = scalar_lea.vmem [#allocation5], %s512_s14 }
  0x54   : > { %778 = dma.done.wait (%p992_p3), %s204_s29, 1024  }
  0x55   : > { %780 = vsyncadd (%p992_p3), %s204_s29, 4294966272  ;;  %v835_v0 = vmov 0.0   ;;  %v250_v1 = vld [vmem:[%s207_s5 + $0x38] sm:$0xff]  ;;  %v249_v2 = vld [vmem:[%s207_s5 + $0x30] sm:$0xff]  ;;  %vm251_vm0 = vcmask 261120   ;;  %s519_s27 = sshll.u32 %s811_s15, 3 }
  0x56   : > { %328 = vmatprep.mubr.f32.mxu0 %v835_v0  ;;  %340 = vmatprep.mubr.f32.mxu1 %v835_v0  ;;  %v248_v3 = vld [vmem:[%s207_s5 + $0x28] sm:$0xff]  ;;  %v247_v4 = vld [vmem:[%s207_s5 + $0x20] sm:$0xff]  ;;  %v246_v5 = vld [vmem:[%s207_s5 + $0x18] sm:$0xff]  ;;  %s520_s8 = sshll.u32 %s815_s16, 4  ;;  %s232_s25 = scalar_lea.vmem [#allocation7], %s512_s14 }
  0x57   : > { %288 = vmatprep.subr.mxu0 %v250_v1  ;;  %525 = vmatprep.subr.mxu1 %v250_v1  ;;  %v235_v6 = vld [vmem:[%s1033_s24] sm:$0xff]  ;;  %v245_v7 = vld [vmem:[%s207_s5 + $0x10] sm:$0xff]  ;;  %v244_v9 = vld [vmem:[%s207_s5 + $0x8] sm:$0xff]  ;;  %s376_s3 = sadd.s32 %s520_s8, %s519_s27  ;;  %s379_s12 = sshll.u32 %s232_s25, 4  ;;  %s1058_s12 = int_to_ptr.vmem [resolvable:$true] %s379_s12 }
  0x58   : > { %289 = vmatpush1.msra.mxu0 %v249_v2  ;;  %529 = vmatpush1.msra.mxu1 %v249_v2  ;;  %v237_v8 = vld [vmem:[%s1033_s24 + $0x10] sm:$0xff]  ;;  %v243_v10 = vld [vmem:[%s207_s5] sm:$0xff]  ;;  %v239_v11 = vmul.f32 2.6220473e-06, %v235_v6  ;;  %v236_v13 = vld [vmem:[%s1033_s24 + $0x8] sm:$0xff]  ;;  %s521_s7 = sshll.u32 %s376_s3, 7 }
  0x59   : > { %290 = vmatprep.subr.mxu0 %v248_v3  ;;  %526 = vmatprep.subr.mxu1 %v248_v3  ;;  %v241_v12 = vmul.f32 2.6220473e-06, %v237_v8  ;;  %v238_v14 = vld [vmem:[%s1033_s24 + $0x18] sm:$0xff]  ;;  %v240_v15 = vmul.f32 2.6220473e-06, %v236_v13  ;;  %s1155_s0 = sld [smem:[#allocation17_spill]] }
  0x5a   : > { %291 = vmatpush1.msra.mxu0 %v247_v4  ;;  %530 = vmatpush1.msra.mxu1 %v247_v4  ;;  %v242_v16 = vmul.f32 2.6220473e-06, %v238_v14  ;;  %s362_s4 = scalar_lea.sflag [#allocation4], %s1040_s20  ;;  %s703_s2 = scalar_lea.vmem %s1058_s12, 1024 }
  0x5b   : > { %292 = vmatprep.subr.mxu0 %v246_v5  ;;  %527 = vmatprep.subr.mxu1 %v246_v5  ;;  %p704_p7 = scmp.ne.s32.totalorder %s1058_s12, %s703_s2  ;;  %p1156_p8 = scmp.ne.s32.totalorder %s1152_s22, 0 }
  0x5c   : > { %293 = vmatpush1.msra.mxu0 %v245_v7  ;;  %531 = vmatpush1.msra.mxu1 %v245_v7  ;;  %s836_s9 = smov [#allocation7]  }
  0x5d   : > { %294 = vmatprep.subr.mxu0 %v244_v9  ;;  %528 = vmatprep.subr.mxu1 %v244_v9  ;;  %p705_p12 = pnand %p704_p7, %p1156_p8  ;;  %s707_s6 = sshll.u32 %s836_s9, 4  ;;  %s708_s6 = int_to_ptr.vmem [resolvable:$false] %s707_s6 }
  0x5e   : > { %295 = vmatpush1.msra.mxu0 %v243_v10  ;;  %532 = vmatpush1.msra.mxu1 %v243_v10  ;;  %s709_s23 = scalar_lea.vmem %s708_s6, 2048  ;;  %p710_p3 = scmp.lt.s32.totalorder %s1058_s12, %s708_s6 }
  0x5f   : > { %514 = vmatmul.mubr.msk.f32.vlgmr.msra.gmra.mxu0 %vm251_vm0, %v239_v11  ;;  %516 = vmatmul.mubr.msk.f32.vlgmr.msra.gmra.mxu1 %vm251_vm0, %v241_v12  ;;  %s1063_s28 = scalar_lea.hbm %s1155_s0, %s521_s7  ;;  %p706_p6 = pneg %p705_p12 }
  0x60   : > { %334 = vmatprep.mubr.f32.mxu0 %v835_v0  ;;  %346 = vmatprep.mubr.f32.mxu1 %v835_v0  ;;  %p711_p0 = scmp.lt.s32.totalorder %s709_s23, %s703_s2 }
  0x62   : > { %p712_p2 = por %p711_p0, %p710_p3 }
  0x63   : > { %515 = vmatmul.mubr.msk.f32.gmra.mxu0 %vm251_vm0, %v240_v15  ;;  %517 = vmatmul.mubr.msk.f32.gmra.mxu1 %vm251_vm0, %v242_v16 }
  0x64   : > { %p713_p11 = pnand %p712_p2, %p706_p6 }
 0x11f   : > { %v330_v17 = vpop.f32.mrf.mxu0  ;;  %v342_v18 = vpop.f32.mrf.mxu1 }
 0x120   : > { %353 = vst [vmem:[%s232_s25] sm:$0xff] %v330_v17  ;;  %357 = vst [vmem:[%s232_s25 + $0x20] sm:$0xff] %v342_v18 }
 0x121   : > { %v332_v19 = vpop.f32.mrf.mxu0  ;;  %v344_v20 = vpop.f32.mrf.mxu1 }
 0x122   : > { %354 = vst [vmem:[%s232_s25 + $0x8] sm:$0xff] %v332_v19  ;;  %358 = vst [vmem:[%s232_s25 + $0x28] sm:$0xff] %v344_v20 }
 0x123   : > { %v336_v21 = vpop.f32.mrf.mxu0  ;;  %v348_v22 = vpop.f32.mrf.mxu1 }
 0x124   : > { %355 = vst [vmem:[%s232_s25 + $0x10] sm:$0xff] %v336_v21  ;;  %359 = vst [vmem:[%s232_s25 + $0x30] sm:$0xff] %v348_v22 }
 0x125   : > { %v338_v23 = vpop.f32.mrf.mxu0  ;;  %v350_v24 = vpop.f32.mrf.mxu1 }
 0x126   : > { %356 = vst [vmem:[%s232_s25 + $0x18] sm:$0xff] %v338_v23  ;;  %360 = vst [vmem:[%s232_s25 + $0x38] sm:$0xff] %v350_v24 }
 0x127   : > { %716 = shalt.err (!%p713_p11)
}
 0x128   : > { %s717_s26 = scalar_lea.hbm %s1063_s28, 1024  ;;  %s721_s29 = scalar_lea.hbm %s1155_s0, 4096 }
 0x129   : > { %p718_p13 = scmp.ne.s32.totalorder %s1063_s28, %s717_s26  ;;  %p722_p4 = scmp.lt.s32.totalorder %s1063_s28, %s1155_s0 }
 0x12a   : > { %p723_p10 = scmp.lt.s32.totalorder %s721_s29, %s717_s26 }
 0x12b   : > { %p719_p1 = pnand %p718_p13, %p1156_p8 }
 0x12c   : > { %p724_p5 = por %p723_p10, %p722_p4 }
 0x12d   : > { %p720_p9 = pneg %p719_p1 }
 0x12f   : > { %p725_p7 = pnand %p724_p5, %p720_p9 }
 0x131   : > { %728 = shalt.err (!%p725_p7)
}
 0x132   : > { %s837_s8 = smov 256   ;;  %s838_s3 = smov 16  }
 0x133   : > { %537 = dma.vmem_to_hbm [thread:$0]  (%p1156_p8), %s1058_s12, 1024, %s1063_s28, %s362_s4, %s837_s8, %s837_s8, %s838_s3  }
 0x134 PF: > { %s1157_s25 = sld [smem:[#allocation11_spill]]  ;;  %p551_p12 = scmp.ge.s32.totalorder %s827_s19, 2 }
 0x135   : > { %p1158_p6 = scmp.ne.s32.totalorder %s1153_s30, 0 }
 0x137   : > { %p547_p3 = pnand %p551_p12, %p1158_p6 }
 0x139   : > { %p548_p0 = pneg %p547_p3 }
 0x13a   : > { %s394_s7 = sand.u32 1, %s1157_s25  }
 0x13b   : > { %s395_s15 = scalar_lea.sflag [#allocation4], %s394_s7 }
 0x13c   : > { %782 = dma.done.wait (%p548_p0), %s395_s15, 1024  }
 0x13d   : > { %784 = vsyncadd (%p548_p0), %s395_s15, 4294966272  ;;  %s21_s19 = sadd.s32 1, %s827_s19   ;;  %s1159_s22 = sld [smem:[#allocation12_spill]] }
 0x13e   : > { %p18_p2 = scmp.ge.s32.totalorder %s21_s19, 6   ;;  %s1160_s14 = sld [smem:[#allocation14_spill]] }
 0x13f   : > { %s1161_s20 = sld [smem:[#allocation13_spill]]  ;;  %s1163_s9 = smov %s791_s10 }
 0x140   : > { %s1162_s28 = sld [smem:[#allocation15_spill]]  ;;  %s1164_s10 = smov %s795_s11 }
 0x141   : > { %s1165_s11 = smov %s1012_s21  ;;  %s1166_s12 = smov %s803_s13 }
 0x142   : > { %s1168_s15 = smov %s819_s17  ;;  %s1169_s16 = smov %s823_s18 }
 0x143   : > { %s1167_s13 = smov %s1159_s22  ;;  %20 = sbr.rel (!%p18_p2) target bundleno = 14 (0xe), region = 86 }
 0x145   : > { %s1170_s17 = smov %s1161_s20 }
 0x146   : > { %s1171_s18 = smov %s1162_s28 }
 0x148   :  { %400 = vsyncpa [#allocation3], 1 }
 0x149   :  { %402 = vsyncpa [#allocation3 + $0x1], 1 }
 0x14a   :  { %403 = vsyncpa [#allocation6], 1 }
 0x14b   :  { %405 = vsyncpa [#allocation6 + $0x1], 1 }
 0x14c   :  { %406 = vsyncpa [#allocation4], 1 }
 0x14d   :  { %408 = vsyncpa [#allocation4 + $0x1], 1 }

</bundles_post_ra>
